<compile_context>
chip_gen: v7x
topology: tpu7x:2x2x1
jax: 0.10.0
libtpu: 0.0.40
codegen_flags: <defaults>
</compile_context>

<pallas_src>
import jax
import jax.numpy as jnp
from jax.experimental import pallas as pl
from jax.experimental.pallas import tpu as pltpu


def _round_up(x, m):
    return (x + m - 1) // m * m


def fm_kernel(bias_ref, x_ref, w_ref, w2_ref, o_ref):
    x = x_ref[...]                                   # (TB, n)  f32 or bf16
    w = w_ref[...]                                   # (n, k+1) = [V1 | V2]
    w2 = w2_ref[...]                                 # (1, n)   = sum_k V2**2 (f32)

    # Single fused MXU matmul with f32 accumulation:
    #   y[:, 0:1] = x @ V1,  y[:, 1:] = x @ V2.
    y = jnp.dot(x, w, preferred_element_type=jnp.float32)         # (TB, k+1)
    one = y[:, 0:1]                                                # (TB, 1)
    out_1 = y[:, 1:]                                               # (TB, k)
    s1 = jnp.sum(out_1 * out_1, axis=1, keepdims=True)             # (TB, 1)

    # Second term on VPU + XLU (not MXU):
    #   sum_k((x^2) @ (V2^2))_k == sum_j x_j^2 * (sum_k V2[j,k]^2).
    xf = x.astype(jnp.float32)
    s2 = jnp.sum((xf * xf) * w2, axis=1, keepdims=True)            # (TB, 1)

    # Dropout: identity in eval mode.
    o_ref[...] = one + 0.5 * (s1 - s2) + bias_ref[0]


def torch_fm_forward(x, V1, V2, global_bias, *, max_batch_tile=2048,
                     use_bf16=False):
    """x: (B, n); V1: (n, 1); V2: (n, k); global_bias: (1,). Returns (B, 1) f32."""
    B, n = x.shape
    k = V2.shape[1]

    compute_dtype = jnp.bfloat16 if use_bf16 else jnp.float32

    # One-time weight prep, hoisted out of the per-tile kernel body.
    W = jnp.concatenate(
        [V1.astype(jnp.float32), V2.astype(jnp.float32)], axis=1
    ).astype(compute_dtype)                                          # (n, k+1)
    w2 = jnp.sum(V2.astype(jnp.float32) ** 2, axis=1)[None, :]       # (1, n) f32
    bias = jnp.reshape(global_bias, (1,)).astype(jnp.float32)        # SMEM scalar

    if x.dtype != compute_dtype:
        x = x.astype(compute_dtype)

    # Balanced batch tiling, no pad copy. TB is a multiple of 8 (sublane
    # aligned); the ragged tail of the last tile (at most 8*num_tiles-1 rows)
    # is handled by Pallas: out-of-bounds input rows hold undefined data and
    # out-of-bounds output rows are discarded -- rows are independent, so the
    # first B output rows are exact.
    num_tiles = pl.cdiv(B, max_batch_tile)
    TB = _round_up(pl.cdiv(B, num_tiles), 8)
    num_tiles = pl.cdiv(B, TB)

    # Explicit scoped-VMEM budget from actual padded, double-buffered buffers.
    itemsize = jnp.dtype(compute_dtype).itemsize
    n_lanes = _round_up(n, 128)
    x_buf = TB * n_lanes * itemsize                        # x tile
    w_buf = _round_up(n, 8) * _round_up(k + 1, 128) * itemsize
    w2_buf = 8 * n_lanes * 4
    o_buf = TB * 128 * 4                                   # (TB, 1) lane-padded
    est = 2 * (x_buf + w_buf + w2_buf + o_buf)             # double-buffered
    vmem_limit = min(max(int(1.25 * est) + (2 << 20), 16 << 20), 48 << 20)

    out = pl.pallas_call(
        fm_kernel,
        out_shape=jax.ShapeDtypeStruct((B, 1), jnp.float32),
        grid=(num_tiles,),
        in_specs=[
            pl.BlockSpec(memory_space=pltpu.MemorySpace.SMEM),   # global_bias
            pl.BlockSpec((TB, n), lambda i: (i, 0)),             # x tile (pipelined)
            pl.BlockSpec((n, k + 1), lambda i: (0, 0)),          # W, VMEM-resident
            pl.BlockSpec((1, n), lambda i: (0, 0)),              # w2 row, VMEM-resident
        ],
        out_specs=pl.BlockSpec((TB, 1), lambda i: (i, 0)),
        compiler_params=pltpu.CompilerParams(
            dimension_semantics=("parallel",),
            vmem_limit_bytes=vmem_limit,
        ),
    )(bias, x, W, w2)

    return out


def reference_forward(x, V1, V2, global_bias):
    x = x.astype(jnp.float32)
    one = x @ V1
    out_1 = x @ V2
    out_2 = (x ** 2) @ (V2 ** 2)
    out_3 = 0.5 * (out_1 ** 2 - out_2)
    out = out_3.sum(axis=1, keepdims=True)
    return one + out + global_bias[0]


if __name__ == "__main__":
    # Module-consistent shapes: n=600 features, k=8 latent factors.
    n, k = 600, 8

    key = jax.random.PRNGKey(0)
    kx, kv1, kv2, kx2 = jax.random.split(key, 4)

    # Deterministic init mirroring __init__: uniform(-0.1, 0.1) for V1/V2,
    # global_bias = 0.
    V1 = jax.random.uniform(kv1, (n, 1), minval=-0.1, maxval=0.1, dtype=jnp.float32)
    V2 = jax.random.uniform(kv2, (n, k), minval=-0.1, maxval=0.1, dtype=jnp.float32)
    global_bias = jnp.zeros((1,), dtype=jnp.float32)

    # Case 1: tile-aligned batch, f32 path.
    B = 8
    x = jax.random.normal(kx, (B, n), dtype=jnp.float32)
    out = jax.block_until_ready(torch_fm_forward(x, V1, V2, global_bias))
    ref = reference_forward(x, V1, V2, global_bias)
    assert out.shape == (B, 1)
    assert jnp.allclose(out, ref, rtol=1e-4, atol=1e-3), (out, ref)

    # Case 2: ragged batch (B not a multiple of the 8-row sublane tile), f32.
    B2 = 13
    x2 = jax.random.normal(kx2, (B2, n), dtype=jnp.float32)
    out2 = jax.block_until_ready(torch_fm_forward(x2, V1, V2, global_bias))
    ref2 = reference_forward(x2, V1, V2, global_bias)
    assert out2.shape == (B2, 1)
    assert jnp.allclose(out2, ref2, rtol=1e-4, atol=1e-3), (out2, ref2)

    # Case 3: opt-in bf16 operand path (f32 accumulation) -- looser tolerance,
    # documented numerics change.
    out3 = jax.block_until_ready(
        torch_fm_forward(x, V1, V2, global_bias, use_bf16=True))
    assert out3.shape == (B, 1)
    assert jnp.allclose(out3, ref, rtol=1e-1, atol=2e-1), (out3, ref)

    print("KERNEL_OK")
</pallas_src>

<mosaic_0001>
module attributes {stable_mosaic.version = 11 : i64} {
  func.func @fm_kernel(%arg0: i32, %arg1: memref<1xf32, #tpu.memory_space<smem>>, %arg2: memref<8x600xf32, #tpu.memory_space<vmem>>, %arg3: memref<600x9xf32, #tpu.memory_space<vmem>>, %arg4: memref<1x600xf32, #tpu.memory_space<vmem>>, %arg5: memref<8x1xf32, #tpu.memory_space<vmem>>) attributes {dimension_semantics = [#tpu.dimension_semantics<parallel>], iteration_bounds = array<i64: 1>, scalar_prefetch = 0 : i64, scratch_operands = 0 : i64, tpu.core_type = #tpu.core_type<tc>, window_params = [{transform_indices = @transform_0, window_bounds = array<i64: 1>}, {transform_indices = @transform_1, window_bounds = array<i64: 8, 600>}, {pipeline_mode = #tpu.pipeline_mode<synchronous>, transform_indices = @transform_2, window_bounds = array<i64: 600, 9>}, {pipeline_mode = #tpu.pipeline_mode<synchronous>, transform_indices = @transform_3, window_bounds = array<i64: 1, 600>}, {transform_indices = @transform_4, window_bounds = array<i64: 8, 1>}]} {
    %c0 = arith.constant 0 : index
    %c0_0 = arith.constant 0 : index
    %0 = vector.load %arg2[%c0, %c0_0] : memref<8x600xf32, #tpu.memory_space<vmem>>, vector<8x600xf32>
    %c0_1 = arith.constant 0 : index
    %c0_2 = arith.constant 0 : index
    %1 = vector.load %arg3[%c0_1, %c0_2] : memref<600x9xf32, #tpu.memory_space<vmem>>, vector<600x9xf32>
    %c0_3 = arith.constant 0 : index
    %c0_4 = arith.constant 0 : index
    %2 = vector.load %arg4[%c0_3, %c0_4] : memref<1x600xf32, #tpu.memory_space<vmem>>, vector<1x600xf32>
    %cst = arith.constant dense<0.000000e+00> : vector<8x9xf32>
    %3 = tpu.matmul %0, %1, %cst {dimension_numbers = #tpu.dot_dimension_numbers<[1], [0], [0], [1], [0, 0, 1, 1], [], []>} : vector<8x600xf32>, vector<600x9xf32>, vector<8x9xf32> -> vector<8x9xf32>
    %4 = vector.extract_strided_slice %3 {offsets = [0, 0], sizes = [8, 1], strides = [1, 1]} : vector<8x9xf32> to vector<8x1xf32>
    %5 = vector.extract_strided_slice %3 {offsets = [0, 1], sizes = [8, 8], strides = [1, 1]} : vector<8x9xf32> to vector<8x8xf32>
    %6 = arith.mulf %5, %5 : vector<8x8xf32>
    %cst_5 = arith.constant dense<0.000000e+00> : vector<8xf32>
    %7 = vector.multi_reduction <add>, %6, %cst_5 [1] : vector<8x8xf32> to vector<8xf32>
    %8 = vector.shape_cast %7 : vector<8xf32> to vector<8x1xf32>
    %9 = arith.mulf %0, %0 : vector<8x600xf32>
    %10 = vector.broadcast %2 : vector<1x600xf32> to vector<8x600xf32>
    %11 = arith.mulf %9, %10 : vector<8x600xf32>
    %cst_6 = arith.constant dense<0.000000e+00> : vector<8xf32>
    %12 = vector.multi_reduction <add>, %11, %cst_6 [1] : vector<8x600xf32> to vector<8xf32>
    %13 = vector.shape_cast %12 : vector<8xf32> to vector<8x1xf32>
    %14 = arith.subf %8, %13 : vector<8x1xf32>
    %cst_7 = arith.constant 5.000000e-01 : f32
    %15 = vector.broadcast %cst_7 : f32 to vector<8x1xf32>
    %16 = arith.mulf %15, %14 : vector<8x1xf32>
    %17 = arith.addf %4, %16 : vector<8x1xf32>
    %c0_8 = arith.constant 0 : index
    %18 = memref.load %arg1[%c0_8] : memref<1xf32, #tpu.memory_space<smem>>
    %19 = vector.broadcast %18 : f32 to vector<8x1xf32>
    %20 = arith.addf %17, %19 : vector<8x1xf32>
    %c0_9 = arith.constant 0 : index
    %c0_10 = arith.constant 0 : index
    %21 = vector.load %arg5[%c0_9, %c0_10] : memref<8x1xf32, #tpu.memory_space<vmem>>, vector<8x1xf32>
    tpu.vector_store %arg5[%c0_9, %c0_10], %20 {strides = array<i32>} : memref<8x1xf32, #tpu.memory_space<vmem>>, vector<8x1xf32>,
    return
  }
  func.func @transform_0(%arg0: i32) -> i32 {
    %c0_i32 = arith.constant 0 : i32
    %c0_i32_0 = arith.constant 0 : i32
    return %c0_i32 : i32
  }
  func.func @transform_1(%arg0: i32) -> (i32, i32) {
    %c0_i32 = arith.constant 0 : i32
    %c0_i32_0 = arith.constant 0 : i32
    return %arg0, %c0_i32 : i32, i32
  }
  func.func @transform_2(%arg0: i32) -> (i32, i32) {
    %c0_i32 = arith.constant 0 : i32
    %c0_i32_0 = arith.constant 0 : i32
    %c0_i32_1 = arith.constant 0 : i32
    return %c0_i32, %c0_i32_0 : i32, i32
  }
  func.func @transform_3(%arg0: i32) -> (i32, i32) {
    %c0_i32 = arith.constant 0 : i32
    %c0_i32_0 = arith.constant 0 : i32
    %c0_i32_1 = arith.constant 0 : i32
    return %c0_i32, %c0_i32_0 : i32, i32
  }
  func.func @transform_4(%arg0: i32) -> (i32, i32) {
    %c0_i32 = arith.constant 0 : i32
    %c0_i32_0 = arith.constant 0 : i32
    return %arg0, %c0_i32 : i32, i32
  }
}

</mosaic_0001>

<bundles_post_ra>
// kernel: tpu_custom_call.1
= control target key start
LH: loop header
LB: loop body
LE: loop exit
PB: predicated region body
PF: predicated region fallthrough
CT: control target
= control target key end

     0   :  { %vm569_vm0 = vmmov 0   ;;  %vm99_vm1 = vcmask 719872   ;;  %vm318_vm2 = vcmask 64512   ;;  %vm371_vm3 = vcmask 7168   ;;  %s858_s2 = inlined_call_operand.vmem [shape: f32[600,9], index: 2, kind: input, shape index: {}]   ;;  %s859_s1 = inlined_call_operand.vmem [shape: f32[8,600], index: 1, kind: input, shape index: {}]   ;;  %s860_s3 = inlined_call_operand.vmem [shape: f32[1,600], index: 3, kind: input, shape index: {}]   ;;  %s861_s0 = inlined_call_operand.<no memory space> [shape: f32[1], index: 0, kind: input, shape index: {}]   ;;  %s862_s4 = inlined_call_operand.vmem [shape: f32[8,1], index: 4, kind: output, shape index: {}]  }
   0x1   :  { %v39_v0 = vld [vmem:[%s858_s2 + $0x80] sm:$0xff]  ;;  %v40_v1 = vld [vmem:[%s858_s2 + $0x88] sm:$0xff]  ;;  %v41_v11 = vld [vmem:[%s858_s2 + $0x90] sm:$0xff] }
   0x2   :  { %v71_v2 = vld [vmem:[%s858_s2 + $0x180] sm:$0xff]  ;;  %v485_v3 = vpack.c.bf16 %v40_v1, %v39_v0  ;;  %v72_v4 = vld [vmem:[%s858_s2 + $0x188] sm:$0xff]  ;;  %v42_v13 = vld [vmem:[%s858_s2 + $0x98] sm:$0xff] }
   0x3   :  { %v23_v5 = vld [vmem:[%s858_s2] sm:$0xff]  ;;  %v24_v6 = vld [vmem:[%s858_s2 + $0x8] sm:$0xff]  ;;  %v517_v7 = vpack.c.bf16 %v72_v4, %v71_v2  ;;  %v73_v14 = vld [vmem:[%s858_s2 + $0x190] sm:$0xff]  ;;  %v489_v16 = vpack.c.bf16 %v42_v13, %v41_v11 }
   0x4   :  { %v487_v8 = vpack.c.bf16 %v24_v6, %v23_v5  ;;  %v55_v9 = vld [vmem:[%s858_s2 + $0x100] sm:$0xff]  ;;  %v56_v10 = vld [vmem:[%s858_s2 + $0x108] sm:$0xff]  ;;  %486 = vmatprep.subr.bf16.mxu0 %v485_v3  ;;  %v74_v15 = vld [vmem:[%s858_s2 + $0x198] sm:$0xff] }
   0x5   :  { %v519_v12 = vpack.c.bf16 %v56_v10, %v55_v9  ;;  %518 = vmatprep.subr.bf16.mxu1 %v517_v7  ;;  %v521_v17 = vpack.c.bf16 %v74_v15, %v73_v14  ;;  %v25_v18 = vld [vmem:[%s858_s2 + $0x10] sm:$0xff]  ;;  %v26_v19 = vld [vmem:[%s858_s2 + $0x18] sm:$0xff]  ;;  %v43_v23 = vld [vmem:[%s858_s2 + $0xa0] sm:$0xff] }
   0x6   :  { %488 = vmatpush3.bf16.msra.mxu0 %v487_v8  ;;  %v57_v20 = vld [vmem:[%s858_s2 + $0x110] sm:$0xff]  ;;  %v491_v21 = vpack.c.bf16 %v26_v19, %v25_v18  ;;  %v58_v22 = vld [vmem:[%s858_s2 + $0x118] sm:$0xff]  ;;  %v44_v24 = vld [vmem:[%s858_s2 + $0xa8] sm:$0xff] }
   0x7   :  { %520 = vmatpush3.bf16.msra.mxu1 %v519_v12  ;;  %490 = vmatprep.subr.bf16.mxu0 %v489_v16  ;;  %v523_v25 = vpack.c.bf16 %v58_v22, %v57_v20  ;;  %v493_v26 = vpack.c.bf16 %v44_v24, %v43_v23  ;;  %v75_v27 = vld [vmem:[%s858_s2 + $0x1a0] sm:$0xff]  ;;  %v76_v28 = vld [vmem:[%s858_s2 + $0x1a8] sm:$0xff]  ;;  %v45_v35 = vld [vmem:[%s858_s2 + $0xb0] sm:$0xff] }
   0x8   :  { %522 = vmatprep.subr.bf16.mxu1 %v521_v17  ;;  %v27_v29 = vld [vmem:[%s858_s2 + $0x20] sm:$0xff]  ;;  %v525_v30 = vpack.c.bf16 %v76_v28, %v75_v27  ;;  %v28_v31 = vld [vmem:[%s858_s2 + $0x28] sm:$0xff]  ;;  %v46_v36 = vld [vmem:[%s858_s2 + $0xb8] sm:$0xff] }
   0x9   :  { %v59_v32 = vld [vmem:[%s858_s2 + $0x120] sm:$0xff]  ;;  %v60_v33 = vld [vmem:[%s858_s2 + $0x128] sm:$0xff]  ;;  %v495_v34 = vpack.c.bf16 %v28_v31, %v27_v29  ;;  %v77_v37 = vld [vmem:[%s858_s2 + $0x1b0] sm:$0xff]  ;;  %v497_v39 = vpack.c.bf16 %v46_v36, %v45_v35 }
   0xa   :  { %492 = vmatpush3.bf16.msra.mxu0 %v491_v21  ;;  %v527_v38 = vpack.c.bf16 %v60_v33, %v59_v32  ;;  %v78_v40 = vld [vmem:[%s858_s2 + $0x1b8] sm:$0xff]  ;;  %v29_v41 = vld [vmem:[%s858_s2 + $0x30] sm:$0xff]  ;;  %v47_v46 = vld [vmem:[%s858_s2 + $0xc0] sm:$0xff] }
   0xb   :  { %524 = vmatpush3.bf16.msra.mxu1 %v523_v25  ;;  %494 = vmatprep.subr.bf16.mxu0 %v493_v26  ;;  %v30_v42 = vld [vmem:[%s858_s2 + $0x38] sm:$0xff]  ;;  %v529_v43 = vpack.c.bf16 %v78_v40, %v77_v37  ;;  %v61_v44 = vld [vmem:[%s858_s2 + $0x130] sm:$0xff]  ;;  %v48_v47 = vld [vmem:[%s858_s2 + $0xc8] sm:$0xff] }
   0xc   :  { %526 = vmatprep.subr.bf16.mxu1 %v525_v30  ;;  %v62_v45 = vld [vmem:[%s858_s2 + $0x138] sm:$0xff]  ;;  %v79_v48 = vld [vmem:[%s858_s2 + $0x1c0] sm:$0xff]  ;;  %v80_v49 = vld [vmem:[%s858_s2 + $0x1c8] sm:$0xff]  ;;  %v499_v50 = vpack.c.bf16 %v30_v42, %v29_v41  ;;  %v501_v52 = vpack.c.bf16 %v48_v47, %v47_v46 }
   0xd   :  { %v531_v51 = vpack.c.bf16 %v62_v45, %v61_v44  ;;  %v31_v53 = vld [vmem:[%s858_s2 + $0x40] sm:$0xff]  ;;  %v32_v54 = vld [vmem:[%s858_s2 + $0x48] sm:$0xff]  ;;  %v533_v56 = vpack.c.bf16 %v80_v49, %v79_v48  ;;  %v49_v58 = vld [vmem:[%s858_s2 + $0xd0] sm:$0xff]  ;;  %v570_v45 = vmov 0.0  }
   0xe   :  { %496 = vmatpush3.bf16.msra.mxu0 %v495_v34  ;;  %v63_v55 = vld [vmem:[%s858_s2 + $0x140] sm:$0xff]  ;;  %v64_v57 = vld [vmem:[%s858_s2 + $0x148] sm:$0xff]  ;;  %v50_v59 = vld [vmem:[%s858_s2 + $0xd8] sm:$0xff]  ;;  %v503_v62 = vpack.c.bf16 %v32_v54, %v31_v53 }
   0xf   :  { %528 = vmatpush3.bf16.msra.mxu1 %v527_v38  ;;  %498 = vmatprep.subr.bf16.mxu0 %v497_v39  ;;  %v81_v60 = vld [vmem:[%s858_s2 + $0x1d0] sm:$0xff]  ;;  %v82_v61 = vld [vmem:[%s858_s2 + $0x1d8] sm:$0xff]  ;;  %v535_v63 = vpack.c.bf16 %v64_v57, %v63_v55  ;;  %v505_v0 = vpack.c.bf16 %v50_v59, %v49_v58  ;;  %v51_v6 = vld [vmem:[%s858_s2 + $0xe0] sm:$0xff]  ;;  %v568_v39 = vmov 0.0|0.0   ;;  %v328_v55 = vlaneseq }
  0x10   :  { %530 = vmatprep.subr.bf16.mxu1 %v529_v43  ;;  %v33_v1 = vld [vmem:[%s858_s2 + $0x50] sm:$0xff]  ;;  %v34_v2 = vld [vmem:[%s858_s2 + $0x58] sm:$0xff]  ;;  %v537_v4 = vpack.c.bf16 %v82_v61, %v81_v60  ;;  %v52_v7 = vld [vmem:[%s858_s2 + $0xe8] sm:$0xff] }
  0x11   :  { %v65_v3 = vld [vmem:[%s858_s2 + $0x150] sm:$0xff]  ;;  %v66_v5 = vld [vmem:[%s858_s2 + $0x158] sm:$0xff]  ;;  %v83_v8 = vld [vmem:[%s858_s2 + $0x1e0] sm:$0xff]  ;;  %v507_v10 = vpack.c.bf16 %v34_v2, %v33_v1  ;;  %v509_v14 = vpack.c.bf16 %v52_v7, %v51_v6 }
  0x12   :  { %500 = vmatpush3.bf16.msra.mxu0 %v499_v50  ;;  %v84_v9 = vld [vmem:[%s858_s2 + $0x1e8] sm:$0xff]  ;;  %v35_v11 = vld [vmem:[%s858_s2 + $0x60] sm:$0xff]  ;;  %v539_v13 = vpack.c.bf16 %v66_v5, %v65_v3  ;;  %v53_v19 = vld [vmem:[%s858_s2 + $0xf0] sm:$0xff] }
  0x13   :  { %532 = vmatpush3.bf16.msra.mxu1 %v531_v51  ;;  %502 = vmatprep.subr.bf16.mxu0 %v501_v52  ;;  %v36_v12 = vld [vmem:[%s858_s2 + $0x68] sm:$0xff]  ;;  %v67_v15 = vld [vmem:[%s858_s2 + $0x160] sm:$0xff]  ;;  %v541_v18 = vpack.c.bf16 %v84_v9, %v83_v8  ;;  %v54_v20 = vld [vmem:[%s858_s2 + $0xf8] sm:$0xff] }
  0x14   :  { %534 = vmatprep.subr.bf16.mxu1 %v533_v56  ;;  %v68_v16 = vld [vmem:[%s858_s2 + $0x168] sm:$0xff]  ;;  %v780_v21 = vld [vmem:[%s859_s1 + $0x18] sm:$0xff]  ;;  %v85_v22 = vld [vmem:[%s858_s2 + $0x1f0] sm:$0xff]  ;;  %v511_v24 = vpack.c.bf16 %v36_v12, %v35_v11  ;;  %v513_v26 = vpack.c.bf16 %v54_v20, %v53_v19  ;;  %v329_v56 = vshrl.u32 %v328_v55, 7 }
  0x15   :  { %v768_v17 = vld [vmem:[%s859_s1 + $0x8] sm:$0xff]  ;;  %v86_v23 = vld [vmem:[%s858_s2 + $0x1f8] sm:$0xff]  ;;  %237 = vmatprep.mubr.f32.mxu1 %v780_v21  ;;  %v543_v25 = vpack.c.bf16 %v68_v16, %v67_v15  ;;  %v37_v27 = vld [vmem:[%s858_s2 + $0x70] sm:$0xff]  ;;  %v325_v11 = vmul.f32 %v780_v21, %v780_v21 }
  0x16   :  { %504 = vmatpush3.bf16.msra.mxu0 %v503_v62  ;;  %167 = vmatprep.mubr.f32.mxu0 %v768_v17  ;;  %v38_v28 = vld [vmem:[%s858_s2 + $0x78] sm:$0xff]  ;;  %v545_v29 = vpack.c.bf16 %v86_v23, %v85_v22  ;;  %v69_v30 = vld [vmem:[%s858_s2 + $0x170] sm:$0xff]  ;;  %v87_v34 = vld [vmem:[%s858_s2 + $0x200] sm:$0xff]  ;;  %v334_v57 = vsub.s32 1, %v329_v56  ;;  %v330_v58 = vsub.s32 0, %v329_v56  ;;  %v338_v60 = vsub.s32 2, %v329_v56 }
  0x17   :  { %536 = vmatpush3.bf16.msra.mxu1 %v535_v63  ;;  %506 = vmatprep.subr.bf16.mxu0 %v505_v0  ;;  %v70_v31 = vld [vmem:[%s858_s2 + $0x178] sm:$0xff]  ;;  %v515_v32 = vpack.c.bf16 %v38_v28, %v37_v27  ;;  %v88_v35 = vld [vmem:[%s858_s2 + $0x208] sm:$0xff]  ;;  %v18_v36 = vld [vmem:[%s859_s1] sm:$0xff]  ;;  %v342_v61 = vsub.s32 3, %v329_v56  ;;  %v323_v62 = vmul.f32 %v768_v17, %v768_v17  ;;  %v346_v16 = vsub.s32 4, %v329_v56 }
  0x18   :  { %538 = vmatprep.subr.bf16.mxu1 %v537_v4  ;;  %v547_v33 = vpack.c.bf16 %v70_v31, %v69_v30  ;;  %v550_v37 = vpack.c.bf16 %v88_v35, %v87_v34  ;;  %v20_v38 = vld [vmem:[%s859_s1 + $0x10] sm:$0xff]  ;;  %v90_v41 = vld [vmem:[%s858_s2 + $0x218] sm:$0xff]  ;;  %v91_v43 = vld [vmem:[%s858_s2 + $0x220] sm:$0xff]  ;;  %v322_v0 = vmul.f32 %v18_v36, %v18_v36 }
  0x19   :  { %v89_v40 = vld [vmem:[%s858_s2 + $0x210] sm:$0xff]  ;;  %v92_v44 = vld [vmem:[%s858_s2 + $0x228] sm:$0xff]  ;;  %v94_v48 = vld [vmem:[%s858_s2 + $0x238] sm:$0xff]  ;;  %v324_v5 = vmul.f32 %v20_v38, %v20_v38 }
  0x1a   :  { %508 = vmatpush3.bf16.msra.mxu0 %v507_v10  ;;  %v553_v42 = vpack.c.bf16 %v90_v41, %v89_v40  ;;  %v556_v46 = vpack.c.bf16 %v92_v44, %v91_v43  ;;  %v93_v47 = vld [vmem:[%s858_s2 + $0x230] sm:$0xff]  ;;  %v95_v50 = vld [vmem:[%s858_s2 + $0x240] sm:$0xff]  ;;  %v96_v51 = vld [vmem:[%s858_s2 + $0x248] sm:$0xff] }
  0x1b   :  { %540 = vmatpush3.bf16.msra.mxu1 %v539_v13  ;;  %510 = vmatprep.subr.bf16.mxu0 %v509_v14  ;;  %v559_v49 = vpack.c.bf16 %v94_v48, %v93_v47  ;;  %v562_v52 = vpack.c.bf16 %v96_v51, %v95_v50  ;;  %v97_v53 = vld [vmem:[%s858_s2 + $0x250] sm:$0xff]  ;;  %v22_v54 = vld [vmem:[%s859_s1 + $0x20] sm:$0xff]  ;;  %s571_s1 = smov 127  }
  0x1c   :  { %542 = vmatprep.subr.bf16.mxu1 %v541_v18  ;;  %v98_v59 = vld [vmem:[%s860_s3] sm:$0x1f]  ;;  %v326_v19 = vmul.f32 %v22_v54, %v22_v54 }
  0x1d   :  { %v335_v63 = vrot.slane %v98_v59, %v334_v57  ;;  %v331_v1 = vrot.slane %v98_v59, %v330_v58  ;;  %v339_v6 = vrot.slane %v98_v59, %v338_v60  ;;  %v343_v12 = vrot.slane %v98_v59, %v342_v61 }
  0x1e   :  { %512 = vmatpush3.bf16.msra.mxu0 %v511_v24  ;;  %v347_v20 = vrot.slane %v98_v59, %v346_v16 }
  0x1f   :  { %544 = vmatpush3.bf16.msra.mxu1 %v543_v25  ;;  %514 = vmatprep.subr.bf16.mxu0 %v513_v26  ;;  %v354_v10 = vmul.f32 %v335_v63, %v323_v62  ;;  %v353_v13 = vmul.f32 %v331_v1, %v322_v0  ;;  %v355_v15 = vmul.f32 %v339_v6, %v324_v5 }
  0x20   :  { %546 = vmatprep.subr.bf16.mxu1 %v545_v29  ;;  %v356_v17 = vmul.f32 %v343_v12, %v325_v11  ;;  %v357_v23 = vmul.f32 %v347_v20, %v326_v19 }
  0x21   :  { %v358_v18 = vadd.f32 %v354_v10, %v353_v13 }
  0x22   :  { %516 = vmatpush3.bf16.msra.mxu0 %v515_v32  ;;  %v361_v25 = vsel %vm99_vm1, %v357_v23, 0.0 }
  0x23   :  { %548 = vmatpush3.bf16.msra.mxu1 %v547_v33  ;;  %549 = vmatprep.subr.bf16.mxu0 %v568_v39  ;;  %v359_v22 = vadd.f32 %v358_v18, %v355_v15 }
  0x25   :  { %168 = vmatmul.mubr.f32.vlgmr.msra.gmra.mrb[0].mxu0 %v18_v36  ;;  %v360_v24 = vadd.f32 %v359_v22, %v356_v17  ;;  %v369_v36 = vstv %s861_s0 }
  0x26   :  { %238 = vmatmul.mubr.f32.vlgmr.msra.gmra.mrb[0].mxu1 %v20_v38  ;;  %551 = vmatpush3.bf16.msra.mxu0 %v550_v37 }
  0x27   :  { %552 = vmatprep.subr.bf16.mxu0 %v568_v39  ;;  %482 = vmatprep.mubr.msk.f32.mxu0 %vm569_vm0, %v570_v45  ;;  %v362_v26 = vadd.f32 %v361_v25, %v360_v24 }
  0x29   :  { %363 = vadd.xlane.f32.xlu1 %v362_v26 }
  0x2a   :  { %554 = vmatpush3.bf16.msra.mxu0 %v553_v42 }
  0x2b   :  { %555 = vmatprep.subr.bf16.mxu0 %v568_v39 }
  0x2e   :  { %557 = vmatpush3.bf16.msra.mxu0 %v556_v46 }
  0x2f   :  { %558 = vmatprep.subr.bf16.mxu0 %v568_v39 }
  0x32   :  { %560 = vmatpush3.bf16.msra.mxu0 %v559_v49 }
  0x33   :  { %561 = vmatprep.subr.bf16.mxu0 %v568_v39 }
  0x36   :  { %563 = vmatpush3.bf16.msra.mxu0 %v562_v52 }
  0x37   :  { %480 = vmatprep.subr.mxu0 %v570_v45 }
  0x3a   :  { %481 = vmatpush3.msra.mxu0 %v97_v53 }
  0x3b   :  { %483 = vmatmul.mubr.msk.f32.vlgmr.msra.gmra.mrb[2].mxu0 %vm99_vm1, %v22_v54 }
  0xb6   :  { %v364_v32 = vpop.xlane.xlu1 %363 }
  0xf8   :  { %v410_v2 = vpop.f32.mrb[0].mxu0 }
  0xf9   :  { %v445_v3 = vpop.f32.mrb[0].mxu1  ;;  %v411_v4 = vpop.f32.mrb[1].mxu0 }
  0xfa   :  { %v412_v7 = vadd.f32 %v411_v4, %v410_v2  ;;  %v446_v8 = vpop.f32.mrb[1].mxu1 }
  0xfb   :  { %v447_v9 = vadd.f32 %v446_v8, %v445_v3 }
  0xfd   :  { %v240_v14 = vadd.f32 %v447_v9, %v412_v7 }
 0x10e   :  { %v309_v27 = vpop.f32.mrb[2].mxu0 }
 0x10f   :  { %v310_v28 = vadd.f32 %v309_v27, %v240_v14  ;;  %v484_v29 = vpop.f32.mrb[3].mxu0 }
 0x111   :  { %v313_v21 = vmul.f32 %v310_v28, %v310_v28 }
 0x113   :  { %315 = vrot.lane.b32.xlu0 %v313_v21, %s571_s1 }
 0x185   :  { %v316_v30 = vpop.permute.xlu0 %315 }
 0x186   :  { %v319_v31 = vsel %vm318_vm2, %v316_v30, 0.0 }
 0x187   :  { %320 = vadd.xlane.f32.xlu0 %v319_v31 }
 0x214   :  { %v321_v33 = vpop.xlane.xlu0 %320 }
 0x215   :  { %v365_v34 = vsub.f32 %v321_v33, %v364_v32 }
 0x217   :  { %v366_v35 = vmul.f32 0.5, %v365_v34 }
 0x219   :  { %v367_v37 = vadd.f32 %v366_v35, %v310_v28 }
 0x21b   :  { %v370_v38 = vadd.f32 %v369_v36, %v367_v37 }
 0x21d   :  { %372 = vst.msk [vmem:[%s862_s4] sm:$0xff] %vm371_vm3, %v370_v38 }

</bundles_post_ra>
